<compile_context>
chip_gen: v6e
topology: v6e:2x2x1
jax: 0.10.0
libtpu: 0.0.40
codegen_flags: <defaults>
</compile_context>

<pallas_src>
import math

import jax
import jax.numpy as jnp
from jax.experimental import pallas as pl
from jax.experimental.pallas import tpu as pltpu


def _logreg_kernel(xp_ref, wb_ref, op_ref):
    # MXU matmul with f32 accumulation, f32 sigmoid (EUP/VPU), cast on store.
    z = jnp.dot(xp_ref[...], wb_ref[...], preferred_element_type=jnp.float32)
    op_ref[...] = jax.nn.sigmoid(z).astype(op_ref.dtype)


def _pack_weight(weight, p, compute_dtype):
    """(d_out, d_in) PyTorch weight -> (p*d_in, p*d_out) block-diagonal matrix."""
    w_t = weight.T.astype(compute_dtype)           # (d_in, d_out)
    if p == 1:
        return w_t
    eye = jnp.eye(p, dtype=compute_dtype)
    return jnp.kron(eye, w_t)                      # block-diag, (p*d_in, p*d_out)


def logreg_forward(x, weight, *, block_rows=2048, compute_dtype=jnp.bfloat16):
    """x: (B, d_in), weight: (d_out, d_in) — PyTorch nn.Linear convention.

    Returns sigmoid(x @ weight.T) with shape (B, d_out) in x.dtype.
    """
    assert block_rows % 8 == 0
    B, d_in = x.shape
    d_out, d_in_w = weight.shape
    assert d_in == d_in_w, "feature-dim mismatch"
    out_dtype = x.dtype

    # Row-packing factor so the kernel's output last dim is a multiple of 128
    # lanes (lane-dense stores).  Guard against awkward d_out blowing up the
    # packed weight; p=1 falls back to the plain (still correct) layout.
    p = 128 // math.gcd(d_out, 128)
    if p * d_out > 512:
        p = 1

    b_pad = ((B + p - 1) // p) * p
    if b_pad != B:
        x = jnp.pad(x, ((0, b_pad - B), (0, 0)))

    rows = b_pad // p            # packed rows (grid dimension)
    kdim = p * d_in              # contraction dim seen by the MXU
    ndim = p * d_out             # lane-dense output width (128 for d_out=8)

    # Free, contiguous reshape; bf16 cast halves the dominant HBM stream.
    xp = x.astype(compute_dtype).reshape(rows, kdim)
    # Hoist/precompute for a reused parameter; constant-folded under jit.
    wb = _pack_weight(weight, p, compute_dtype)

    # Batch tile: full array if it fits, else block_rows (multiple of 8).
    tbp = rows if rows <= block_rows else block_rows
    grid = (pl.cdiv(rows, tbp),)

    cost = pl.CostEstimate(
        flops=2 * rows * kdim * ndim,
        transcendentals=rows * ndim,
        bytes_accessed=(xp.size * jnp.dtype(compute_dtype).itemsize
                        + wb.size * jnp.dtype(compute_dtype).itemsize
                        + rows * ndim * jnp.dtype(out_dtype).itemsize),
    )

    out_packed = pl.pallas_call(
        _logreg_kernel,
        out_shape=jax.ShapeDtypeStruct((rows, ndim), out_dtype),
        grid=grid,
        in_specs=[
            pl.BlockSpec((tbp, kdim), lambda i: (i, 0)),   # streamed x tiles
            pl.BlockSpec((kdim, ndim), lambda i: (0, 0)),  # weight resident in VMEM
        ],
        out_specs=pl.BlockSpec((tbp, ndim), lambda i: (i, 0)),
        compiler_params=pltpu.CompilerParams(
            dimension_semantics=("parallel",),             # 2x on v7x megacore
            vmem_limit_bytes=32 * 1024 * 1024,             # fits v5e/v6e/v7x
        ),
        cost_estimate=cost,
    )(xp, wb)

    # Free contiguous reshape back to (b_pad, d_out); drop padding rows.
    out = out_packed.reshape(b_pad, d_out)
    return out[:B] if b_pad != B else out


def logreg_reference(x, weight):
    return jax.nn.sigmoid(x @ weight.T)


def _bf16_matched_reference(x, weight):
    # Same bf16-rounded products as the kernel, f32 accumulation.
    z = jnp.dot(x.astype(jnp.bfloat16), weight.T.astype(jnp.bfloat16),
                preferred_element_type=jnp.float32)
    return jax.nn.sigmoid(z)


if __name__ == "__main__":
    # Small shapes consistent with the module: d_in=32 features, d_out=8 outputs.
    d_in, d_out = 32, 8
    key = jax.random.PRNGKey(0)
    kx, kw, kx2 = jax.random.split(key, 3)

    bound = 1.0 / jnp.sqrt(jnp.float32(d_in))
    weight = jax.random.uniform(
        kw, (d_out, d_in), dtype=jnp.float32, minval=-bound, maxval=bound
    )

    fwd = jax.jit(logreg_forward)

    # Main check: B divisible by the packing factor.
    B = 64
    x = jax.random.normal(kx, (B, d_in), dtype=jnp.float32)
    out = jax.block_until_ready(fwd(x, weight))
    assert out.shape == (B, d_out)
    assert jnp.allclose(out, _bf16_matched_reference(x, weight),
                        atol=1e-5, rtol=1e-5), "mismatch vs bf16-matched reference"
    assert jnp.allclose(out, logreg_reference(x, weight),
                        atol=2e-2, rtol=2e-2), "mismatch vs f32 reference"

    # Ragged batch exercises the padding path.
    B2 = 37
    x2 = jax.random.normal(kx2, (B2, d_in), dtype=jnp.float32)
    out2 = jax.block_until_ready(fwd(x2, weight))
    assert out2.shape == (B2, d_out)
    assert jnp.allclose(out2, _bf16_matched_reference(x2, weight),
                        atol=1e-5, rtol=1e-5), "ragged-batch mismatch"

    print("KERNEL_OK")
</pallas_src>

<mosaic_0001>
module attributes {stable_mosaic.version = 11 : i64} {
  func.func @_logreg_kernel(%arg0: i32, %arg1: memref<4x512xbf16, #tpu.memory_space<vmem>>, %arg2: memref<512x128xbf16, #tpu.memory_space<vmem>>, %arg3: memref<4x128xf32, #tpu.memory_space<vmem>>) attributes {dimension_semantics = [#tpu.dimension_semantics<parallel>], iteration_bounds = array<i64: 1>, scalar_prefetch = 0 : i64, scratch_operands = 0 : i64, tpu.core_type = #tpu.core_type<tc>, window_params = [{transform_indices = @transform_0, window_bounds = array<i64: 4, 512>}, {pipeline_mode = #tpu.pipeline_mode<synchronous>, transform_indices = @transform_1, window_bounds = array<i64: 512, 128>}, {transform_indices = @transform_2, window_bounds = array<i64: 4, 128>}]} {
    %c0 = arith.constant 0 : index
    %c0_0 = arith.constant 0 : index
    %0 = vector.load %arg1[%c0, %c0_0] : memref<4x512xbf16, #tpu.memory_space<vmem>>, vector<4x512xbf16>
    %c0_1 = arith.constant 0 : index
    %c0_2 = arith.constant 0 : index
    %1 = vector.load %arg2[%c0_1, %c0_2] : memref<512x128xbf16, #tpu.memory_space<vmem>>, vector<512x128xbf16>
    %cst = arith.constant dense<0.000000e+00> : vector<4x128xf32>
    %2 = tpu.matmul %0, %1, %cst {dimension_numbers = #tpu.dot_dimension_numbers<[1], [0], [0], [1], [0, 0, 1, 1], [], []>} : vector<4x512xbf16>, vector<512x128xbf16>, vector<4x128xf32> -> vector<4x128xf32>
    %3 = arith.negf %2 : vector<4x128xf32>
    %4 = math.exp %3 : vector<4x128xf32>
    %cst_3 = arith.constant 1.000000e+00 : f32
    %5 = vector.broadcast %cst_3 : f32 to vector<4x128xf32>
    %6 = arith.addf %5, %4 : vector<4x128xf32>
    %7 = arith.divf %5, %6 : vector<4x128xf32>
    %c0_4 = arith.constant 0 : index
    %c0_5 = arith.constant 0 : index
    %8 = vector.load %arg3[%c0_4, %c0_5] : memref<4x128xf32, #tpu.memory_space<vmem>>, vector<4x128xf32>
    tpu.vector_store %arg3[%c0_4, %c0_5], %7 {strides = array<i32>} : memref<4x128xf32, #tpu.memory_space<vmem>>, vector<4x128xf32>,
    return
  }
  func.func @transform_0(%arg0: i32) -> (i32, i32) {
    %c0_i32 = arith.constant 0 : i32
    %c0_i32_0 = arith.constant 0 : i32
    return %arg0, %c0_i32 : i32, i32
  }
  func.func @transform_1(%arg0: i32) -> (i32, i32) {
    %c0_i32 = arith.constant 0 : i32
    %c0_i32_0 = arith.constant 0 : i32
    %c0_i32_1 = arith.constant 0 : i32
    return %c0_i32, %c0_i32_0 : i32, i32
  }
  func.func @transform_2(%arg0: i32) -> (i32, i32) {
    %c0_i32 = arith.constant 0 : i32
    %c0_i32_0 = arith.constant 0 : i32
    return %arg0, %c0_i32 : i32, i32
  }
}

</mosaic_0001>

<bundles_post_ra>
// kernel: logreg_forward.1
= control target key start
LH: loop header
LB: loop body
LE: loop exit
PB: predicated region body
PF: predicated region fallthrough
CT: control target
= control target key end

     0   :  { %v497_v22 = vmov 1983009808   ;;  %v82_v24 = vlaneseq  ;;  %s615_s1 = inlined_call_operand.vmem [shape: bf16[512,128], index: 1, kind: input, shape index: {}]   ;;  %s616_s0 = inlined_call_operand.vmem [shape: bf16[4,512], index: 0, kind: input, shape index: {}]   ;;  %s617_s2 = inlined_call_operand.vmem [shape: f32[4,128], index: 2, kind: output, shape index: {}]  }
   0x1   :  { %v460_v0 = vld [vmem:[%s615_s1 + $0x78] sm:$0xff]   ;;  %v464_v4 = vld [vmem:[%s615_s1 + $0x70] sm:$0xff]   ;;  %v468_v8 = vld [vmem:[%s615_s1 + $0x68] sm:$0xff]   ;;  %v80_v23 = vunpack.c.l.s4 %v497_v22 }
   0x2   :  { %v461_v1 = vld [vmem:[%s615_s1 + $0xf8] sm:$0xff]   ;;  %415 = vmatprep.subr.bf16.mxu0 %v460_v0  ;;  %v465_v5 = vld [vmem:[%s615_s1 + $0xf0] sm:$0xff]   ;;  %v469_v9 = vld [vmem:[%s615_s1 + $0xe8] sm:$0xff]   ;;  %v83_v30 = vshrl.u32 %v82_v24, 7 }
   0x3   :  { %v462_v2 = vld [vmem:[%s615_s1 + $0x38] sm:$0xff]   ;;  %437 = vmatprep.subr.bf16.mxu1 %v461_v1  ;;  %v466_v6 = vld [vmem:[%s615_s1 + $0x30] sm:$0xff]   ;;  %v470_v10 = vld [vmem:[%s615_s1 + $0x28] sm:$0xff]   ;;  %v81_v29 = vunpack.c.0.s8 %v80_v23 }
   0x4   :  { %v463_v3 = vld [vmem:[%s615_s1 + $0xb8] sm:$0xff]   ;;  %416 = vmatpush3.bf16.msra.mxu0 %v462_v2  ;;  %v467_v7 = vld [vmem:[%s615_s1 + $0xb0] sm:$0xff]   ;;  %v471_v11 = vld [vmem:[%s615_s1 + $0xa8] sm:$0xff]  }
   0x5   :  { %438 = vmatpush3.bf16.msra.mxu1 %v463_v3  ;;  %417 = vmatprep.subr.bf16.mxu0 %v464_v4  ;;  %v472_v12 = vld [vmem:[%s615_s1 + $0x60] sm:$0xff]   ;;  %v476_v16 = vld [vmem:[%s615_s1 + $0x58] sm:$0xff]   ;;  %v480_v20 = vld [vmem:[%s615_s1 + $0x50] sm:$0xff]   ;;  %v84_v35 = vsub.s32 %v81_v29, %v83_v30 }
   0x6   :  { %439 = vmatprep.subr.bf16.mxu1 %v465_v5  ;;  %v473_v13 = vld [vmem:[%s615_s1 + $0xe0] sm:$0xff]   ;;  %v477_v17 = vld [vmem:[%s615_s1 + $0xd8] sm:$0xff]   ;;  %v481_v21 = vld [vmem:[%s615_s1 + $0xd0] sm:$0xff]  }
   0x7   :  { %v474_v14 = vld [vmem:[%s615_s1 + $0x20] sm:$0xff]   ;;  %v478_v18 = vld [vmem:[%s615_s1 + $0x18] sm:$0xff]   ;;  %v482_v25 = vld [vmem:[%s615_s1 + $0x10] sm:$0xff]  }
   0x8   :  { %418 = vmatpush3.bf16.msra.mxu0 %v466_v6  ;;  %v475_v15 = vld [vmem:[%s615_s1 + $0xa0] sm:$0xff]   ;;  %v479_v19 = vld [vmem:[%s615_s1 + $0x98] sm:$0xff]   ;;  %v483_v26 = vld [vmem:[%s615_s1 + $0x90] sm:$0xff]  }
   0x9   :  { %440 = vmatpush3.bf16.msra.mxu1 %v467_v7  ;;  %419 = vmatprep.subr.bf16.mxu0 %v468_v8  ;;  %v484_v27 = vld [vmem:[%s615_s1 + $0x48] sm:$0xff]   ;;  %v488_v33 = vld [vmem:[%s615_s1 + $0x40] sm:$0xff]  }
   0xa   :  { %441 = vmatprep.subr.bf16.mxu1 %v469_v9  ;;  %v485_v28 = vld [vmem:[%s615_s1 + $0xc8] sm:$0xff]   ;;  %v489_v34 = vld [vmem:[%s615_s1 + $0xc0] sm:$0xff]  }
   0xb   :  { %v486_v31 = vld [vmem:[%s615_s1 + $0x8] sm:$0xff]   ;;  %v490_v36 = vld [vmem:[%s615_s1] sm:$0xff]  }
   0xc   :  { %420 = vmatpush3.bf16.msra.mxu0 %v470_v10  ;;  %v487_v32 = vld [vmem:[%s615_s1 + $0x88] sm:$0xff]   ;;  %v491_v37 = vld [vmem:[%s615_s1 + $0x80] sm:$0xff]  }
   0xd   :  { %442 = vmatpush3.bf16.msra.mxu1 %v471_v11  ;;  %421 = vmatprep.subr.bf16.mxu0 %v472_v12  ;;  %v12_v38 = vld [vmem:[%s616_s0] sm:$0xff] }
   0xe   :  { %443 = vmatprep.subr.bf16.mxu1 %v473_v13  ;;  %v85_v39 = vrot.slane %v12_v38, %v84_v35  ;;  %v78_v40 = vcombine.high %v12_v38, %v12_v38 }
  0x10   :  { %422 = vmatpush3.bf16.msra.mxu0 %v474_v14  ;;  %v93_v41 = vcombine.high %v85_v39, %v85_v39  ;;  %v92_v42 = vrot.slane %v78_v40, %v84_v35 }
  0x11   :  { %444 = vmatpush3.bf16.msra.mxu1 %v475_v15  ;;  %423 = vmatprep.subr.bf16.mxu0 %v476_v16 }
  0x12   :  { %445 = vmatprep.subr.bf16.mxu1 %v477_v17  ;;  %323 = vmatprep.mubr.bf16.mxu0 %v93_v41  ;;  %v94_v43 = vcombine.high %v92_v42, %v92_v42 }
  0x14   :  { %424 = vmatpush3.bf16.msra.mxu0 %v478_v18  ;;  %363 = vmatprep.mubr.bf16.mxu1 %v94_v43 }
  0x15   :  { %446 = vmatpush3.bf16.msra.mxu1 %v479_v19  ;;  %425 = vmatprep.subr.bf16.mxu0 %v480_v20 }
  0x16   :  { %447 = vmatprep.subr.bf16.mxu1 %v481_v21 }
  0x18   :  { %426 = vmatpush3.bf16.msra.mxu0 %v482_v25 }
  0x19   :  { %448 = vmatpush3.bf16.msra.mxu1 %v483_v26  ;;  %427 = vmatprep.subr.bf16.mxu0 %v484_v27 }
  0x1a   :  { %449 = vmatprep.subr.bf16.mxu1 %v485_v28 }
  0x1c   :  { %428 = vmatpush3.bf16.msra.mxu0 %v486_v31 }
  0x1d   :  { %450 = vmatpush3.bf16.msra.mxu1 %v487_v32  ;;  %429 = vmatprep.subr.bf16.mxu0 %v488_v33 }
  0x1e   :  { %451 = vmatprep.subr.bf16.mxu1 %v489_v34 }
  0x20   :  { %430 = vmatpush3.bf16.msra.mxu0 %v490_v36 }
  0x21   :  { %452 = vmatpush3.bf16.msra.mxu1 %v491_v37 }
  0x23   :  { %324 = vmatmul.mubr.bf16.vlgmr.msra.gmra.mxu0 %v85_v39 }
  0x24   :  { %364 = vmatmul.mubr.bf16.vlgmr.msra.gmra.mxu1 %v92_v42 }
  0xe3   :  { %v431_v44 = vpop.f32.mrf.mxu0 }
  0xe4   :  { %v453_v45 = vpop.f32.mrf.mxu1 }
  0xe5   :  { %v432_v46 = vpop.f32.mrf.mxu0 }
  0xe6   :  { %v433_v47 = vadd.f32 %v432_v46, %v431_v44  ;;  %v454_v48 = vpop.f32.mrf.mxu1 }
  0xe7   :  { %v434_v49 = vpop.f32.mrf.mxu0  ;;  %v455_v50 = vadd.f32 %v454_v48, %v453_v45 }
  0xe8   :  { %v456_v51 = vpop.f32.mrf.mxu1 }
  0xe9   :  { %v435_v52 = vpop.f32.mrf.mxu0  ;;  %v366_v53 = vadd.f32 %v455_v50, %v433_v47 }
  0xea   :  { %v457_v54 = vpop.f32.mrf.mxu1 }
  0xeb   :  { %v414_v55 = vmul.f32 -1.442695, %v366_v53 }
  0xed   :  { %493 = vpow2.f32 %v414_v55 }
  0xfa   :  { %v494_v56 = vpop.eup %493 }
  0xfb   :  { %v374_v57 = vadd.f32 1.0, %v494_v56 }
  0xfd   :  { %495 = vrcp.f32 %v374_v57 }
 0x10a   :  { %v496_v58 = vpop.eup %495 }
 0x10b   :  { %377 = vst [vmem:[%s617_s2] sm:$0xf] %v496_v58 }

</bundles_post_ra>
